<compile_context>
chip_gen: v7x
topology: tpu7x:2x2x1
jax: 0.10.0
libtpu: 0.0.40
codegen_flags: <defaults>
</compile_context>

<pallas_src>
import functools

import jax
import jax.numpy as jnp
from jax.experimental import pallas as pl
from jax.experimental.pallas import tpu as pltpu


def _vmem_config():
    """Returns (per-input-block tile budget bytes, scoped VMEM limit bytes).

    The budget accounts for the true per-step footprint: 2 inputs x 2 pipeline
    buffers x block_bytes plus ~2 blocks worth of in-kernel f32 temporaries
    (only one scaled tile is live at a time after the v3 restructuring).
    """
    phys = 0
    try:
        info = pltpu.get_tpu_info()
        phys = int(getattr(info, "vmem_capacity_bytes", 0) or 0)
    except Exception:
        phys = 0
    if phys >= 100 * 1024 * 1024:
        # v5e / v6e: 128 MiB physical VMEM -> big tiles amortize the per-grid-step
        # overhead and recover the HBM roofline.
        return 8 * 1024 * 1024, 96 * 1024 * 1024
    # v7x (64 MiB physical) or unknown generation: stay conservative.
    return 3 * 1024 * 1024, 48 * 1024 * 1024


def _choose_row_tile(b, dtype_bytes, tile_budget_bytes):
    """Largest row tile TR that divides b, keeps a (TR, b) input block under the
    per-block budget, and leaves >= 2 grid tiles (so both v7x TensorCores get
    work).  Prefers lane-aligned TR (multiple of 128) and an even tile count."""

    def fits(tr):
        return (b % tr == 0
                and tr * b * dtype_bytes <= tile_budget_bytes
                and b // tr >= 2)

    # Pass 1: lane-aligned tiles (aligned diag slice, aligned index math).
    for prefer_even in (True, False):
        for tr in (2048, 1024, 512, 256, 128):
            if fits(tr) and (not prefer_even or (b // tr) % 2 == 0):
                return tr
    # Pass 2: sublane-aligned tiles for small B.
    for prefer_even in (True, False):
        for tr in (64, 32, 16, 8):
            if fits(tr) and (not prefer_even or (b // tr) % 2 == 0):
                return tr
    # Tiny or irregular B: single whole-matrix tile (block == full array dims,
    # so the (8,128) divisibility rule does not apply).
    return b


def _clip_loss_kernel(img_ref, txt_ref, out_ref, *, inv_temperature, row_tile,
                      batch):
    i = pl.program_id(0)
    col_start = i * row_tile  # label columns for this row tile: [i*TR, i*TR+TR)
    lane_aligned = (row_tile % 128 == 0)

    if lane_aligned:
        # (TR, TR) diagonal mask; diag block is an aligned slice of the VMEM ref.
        r = jax.lax.broadcasted_iota(jnp.int32, (row_tile, row_tile), 0)
        c = jax.lax.broadcasted_iota(jnp.int32, (row_tile, row_tile), 1)
        diag_mask = r == c
        diag_start = pl.multiple_of(col_start, 128)
    else:
        # Full-width mask over (TR, B); reuses the already-live scaled tile.
        r = jax.lax.broadcasted_iota(jnp.int32, (row_tile, batch), 0)
        c = jax.lax.broadcasted_iota(jnp.int32, (row_tile, batch), 1)

    def partial_ce_sum(ref):
        # Upcast + scale inside the per-direction call so only one f32 (TR, B)
        # temporary is live at a time.
        logits = ref[...].astype(jnp.float32) * inv_temperature            # (TR, B)
        m = jnp.max(logits, axis=-1, keepdims=True)                         # (TR, 1)
        lse = m + jnp.log(jnp.sum(jnp.exp(logits - m), axis=-1,
                                  keepdims=True))                           # (TR, 1)
        if lane_aligned:
            diag_blk = (ref[:, pl.ds(diag_start, row_tile)]
                        .astype(jnp.float32) * inv_temperature)             # (TR, TR)
            diag = jnp.sum(jnp.where(diag_mask, diag_blk, 0.0),
                           axis=-1, keepdims=True)                          # (TR, 1)
        else:
            mask = c == r + col_start                                        # (TR, B)
            diag = jnp.sum(jnp.where(mask, logits, 0.0),
                           axis=-1, keepdims=True)                          # (TR, 1)
        return jnp.sum(lse - diag)                                           # scalar

    partial = partial_ce_sum(img_ref) + partial_ce_sum(txt_ref)
    # Tiny lane-dense (1, 1, 128) block; wrapper reads [:, 0, 0].
    out_ref[...] = jnp.full(out_ref.shape, partial, dtype=jnp.float32)


def symmetric_clip_loss(logits_per_image, logits_per_text, temperature=0.07,
                        row_tile=None):
    """Pallas implementation of SymmetricCLIPLoss.forward.

    Args:
      logits_per_image: (B, B) array (f32 or bf16; bf16 halves HBM traffic).
      logits_per_text:  (B, B) array.
      temperature: python float.
      row_tile: optional row-tile override (must divide B; multiple of 8 or == B).
    Returns:
      scalar float32 loss.
    """
    b = logits_per_image.shape[0]
    assert logits_per_image.shape == (b, b)
    assert logits_per_text.shape == (b, b)

    tile_budget, vmem_limit = _vmem_config()
    if row_tile is None:
        row_tile = _choose_row_tile(
            b, jnp.dtype(logits_per_image.dtype).itemsize, tile_budget)
    assert b % row_tile == 0
    assert row_tile % 8 == 0 or row_tile == b
    num_tiles = b // row_tile

    # Note: multiplying by 1/temperature (instead of dividing) introduces a ~1 ulp
    # difference vs the PyTorch reference; well within tolerance.
    kernel = functools.partial(_clip_loss_kernel,
                               inv_temperature=1.0 / float(temperature),
                               row_tile=row_tile,
                               batch=b)

    partials = pl.pallas_call(
        kernel,
        out_shape=jax.ShapeDtypeStruct((num_tiles, 1, 128), jnp.float32),
        grid=(num_tiles,),
        in_specs=[
            pl.BlockSpec((row_tile, b), lambda i: (i, 0)),
            pl.BlockSpec((row_tile, b), lambda i: (i, 0)),
        ],
        out_specs=pl.BlockSpec((1, 1, 128), lambda i: (i, 0, 0)),
        compiler_params=pltpu.CompilerParams(
            dimension_semantics=("parallel",),
            vmem_limit_bytes=vmem_limit,
        ),
    )(logits_per_image, logits_per_text)

    # Final tiny reduction in plain JAX: mean over both directions' B rows each.
    return 0.5 * jnp.sum(partials[:, 0, 0]) / b


def _reference_loss(logits_per_image, logits_per_text, temperature=0.07):
    li = logits_per_image.astype(jnp.float32) / temperature
    lt = logits_per_text.astype(jnp.float32) / temperature
    b = li.shape[0]
    labels = jnp.arange(b)

    def ce(logits):
        logp = jax.nn.log_softmax(logits, axis=-1)
        return -jnp.mean(logp[jnp.arange(b), labels])

    return 0.5 * (ce(li) + ce(lt))


if __name__ == "__main__":
    key = jax.random.PRNGKey(0)

    def make_logits(b, hidden, k):
        ki, kt = jax.random.split(k)
        img = jax.random.normal(ki, (b, hidden), dtype=jnp.float32)
        txt = jax.random.normal(kt, (b, hidden), dtype=jnp.float32)
        img = img / jnp.linalg.norm(img, axis=-1, keepdims=True)
        txt = txt / jnp.linalg.norm(txt, axis=-1, keepdims=True)
        lpi = img @ txt.T                      # (B, B) CLIP-style logits
        return lpi, lpi.T

    k1, k2 = jax.random.split(key)

    # 1) Small batch (B=16): sublane-tile path (TR=8, 2 tiles, full-width diag mask).
    lpi, lpt = make_logits(16, 32, k1)
    ref = _reference_loss(lpi, lpt, temperature=0.07)

    loss_auto = jax.block_until_ready(symmetric_clip_loss(lpi, lpt, temperature=0.07))
    assert jnp.allclose(loss_auto, ref, atol=1e-4, rtol=1e-4), (loss_auto, ref)

    loss_tiled = jax.block_until_ready(
        symmetric_clip_loss(lpi, lpt, temperature=0.07, row_tile=8))
    assert jnp.allclose(loss_tiled, ref, atol=1e-4, rtol=1e-4), (loss_tiled, ref)

    # bf16 inputs (halved HBM traffic; kernel upcasts internally).
    lpi_bf, lpt_bf = lpi.astype(jnp.bfloat16), lpt.astype(jnp.bfloat16)
    ref_bf = _reference_loss(lpi_bf, lpt_bf, temperature=0.07)
    loss_bf = jax.block_until_ready(
        symmetric_clip_loss(lpi_bf, lpt_bf, temperature=0.07))
    assert jnp.allclose(loss_bf, ref_bf, atol=1e-4, rtol=1e-4), (loss_bf, ref_bf)

    # 2) Lane-aligned path (B=256 -> TR=128): exercises the aligned ref-slice diag.
    lpi2, lpt2 = make_logits(256, 64, k2)
    ref2 = _reference_loss(lpi2, lpt2, temperature=0.07)
    loss2 = jax.block_until_ready(symmetric_clip_loss(lpi2, lpt2, temperature=0.07))
    assert jnp.allclose(loss2, ref2, atol=1e-4, rtol=1e-4), (loss2, ref2)

    print("KERNEL_OK")
</pallas_src>

<mosaic_0001>
module attributes {stable_mosaic.version = 11 : i64} {
  func.func @_clip_loss_kernel(%arg0: i32, %arg1: memref<8x16xf32, #tpu.memory_space<vmem>>, %arg2: memref<8x16xf32, #tpu.memory_space<vmem>>, %arg3: memref<1x1x128xf32, #tpu.memory_space<vmem>>) attributes {dimension_semantics = [#tpu.dimension_semantics<parallel>], iteration_bounds = array<i64: 2>, scalar_prefetch = 0 : i64, scratch_operands = 0 : i64, tpu.core_type = #tpu.core_type<tc>, window_params = [{transform_indices = @transform_0, window_bounds = array<i64: 8, 16>}, {transform_indices = @transform_1, window_bounds = array<i64: 8, 16>}, {transform_indices = @transform_2, window_bounds = array<i64: 1, 1, 128>}]} {
    %c8_i32 = arith.constant 8 : i32
    %0 = arith.muli %arg0, %c8_i32 : i32
    %1 = tpu.iota {dimensions = array<i32: 0>} : vector<8x16xi32>
    %2 = tpu.iota {dimensions = array<i32: 1>} : vector<8x16xi32>
    %c0 = arith.constant 0 : index
    %c0_0 = arith.constant 0 : index
    %3 = vector.load %arg1[%c0, %c0_0] : memref<8x16xf32, #tpu.memory_space<vmem>>, vector<8x16xf32>
    %cst = arith.constant 14.2857141 : f32
    %4 = vector.broadcast %cst : f32 to vector<8x16xf32>
    %5 = arith.mulf %3, %4 : vector<8x16xf32>
    %cst_1 = arith.constant dense<0xFF800000> : vector<8xf32>
    %6 = vector.multi_reduction <maximumf>, %5, %cst_1 [1] : vector<8x16xf32> to vector<8xf32>
    %7 = vector.shape_cast %6 : vector<8xf32> to vector<8x1xf32>
    %8 = vector.broadcast %7 : vector<8x1xf32> to vector<8x16xf32>
    %9 = arith.subf %5, %8 : vector<8x16xf32>
    %10 = math.exp %9 : vector<8x16xf32>
    %cst_2 = arith.constant dense<0.000000e+00> : vector<8xf32>
    %11 = vector.multi_reduction <add>, %10, %cst_2 [1] : vector<8x16xf32> to vector<8xf32>
    %12 = vector.shape_cast %11 : vector<8xf32> to vector<8x1xf32>
    %13 = math.log %12 : vector<8x1xf32>
    %14 = arith.addf %7, %13 : vector<8x1xf32>
    %15 = vector.broadcast %0 : i32 to vector<8x16xi32>
    %16 = arith.addi %1, %15 : vector<8x16xi32>
    %17 = arith.cmpi eq, %2, %16 : vector<8x16xi32>
    %cst_3 = arith.constant 0.000000e+00 : f32
    %18 = vector.broadcast %cst_3 : f32 to vector<8x16xf32>
    %19 = arith.select %17, %5, %18 : vector<8x16xi1>, vector<8x16xf32>
    %cst_4 = arith.constant dense<0.000000e+00> : vector<8xf32>
    %20 = vector.multi_reduction <add>, %19, %cst_4 [1] : vector<8x16xf32> to vector<8xf32>
    %21 = vector.shape_cast %20 : vector<8xf32> to vector<8x1xf32>
    %22 = arith.subf %14, %21 : vector<8x1xf32>
    %23 = vector.shape_cast %22 : vector<8x1xf32> to vector<1x8x1xf32>
    %cst_5 = arith.constant dense<0.000000e+00> : vector<1xf32>
    %24 = vector.multi_reduction <add>, %23, %cst_5 [1, 2] : vector<1x8x1xf32> to vector<1xf32>
    %25 = vector.shape_cast %24 : vector<1xf32> to vector<1x1x1xf32>
    %26 = vector.extract %25[0, 0, 0] : f32 from vector<1x1x1xf32>
    %c0_6 = arith.constant 0 : index
    %c0_7 = arith.constant 0 : index
    %27 = vector.load %arg2[%c0_6, %c0_7] : memref<8x16xf32, #tpu.memory_space<vmem>>, vector<8x16xf32>
    %cst_8 = arith.constant 14.2857141 : f32
    %28 = vector.broadcast %cst_8 : f32 to vector<8x16xf32>
    %29 = arith.mulf %27, %28 : vector<8x16xf32>
    %cst_9 = arith.constant dense<0xFF800000> : vector<8xf32>
    %30 = vector.multi_reduction <maximumf>, %29, %cst_9 [1] : vector<8x16xf32> to vector<8xf32>
    %31 = vector.shape_cast %30 : vector<8xf32> to vector<8x1xf32>
    %32 = vector.broadcast %31 : vector<8x1xf32> to vector<8x16xf32>
    %33 = arith.subf %29, %32 : vector<8x16xf32>
    %34 = math.exp %33 : vector<8x16xf32>
    %cst_10 = arith.constant dense<0.000000e+00> : vector<8xf32>
    %35 = vector.multi_reduction <add>, %34, %cst_10 [1] : vector<8x16xf32> to vector<8xf32>
    %36 = vector.shape_cast %35 : vector<8xf32> to vector<8x1xf32>
    %37 = math.log %36 : vector<8x1xf32>
    %38 = arith.addf %31, %37 : vector<8x1xf32>
    %39 = vector.broadcast %0 : i32 to vector<8x16xi32>
    %40 = arith.addi %1, %39 : vector<8x16xi32>
    %41 = arith.cmpi eq, %2, %40 : vector<8x16xi32>
    %cst_11 = arith.constant 0.000000e+00 : f32
    %42 = vector.broadcast %cst_11 : f32 to vector<8x16xf32>
    %43 = arith.select %41, %29, %42 : vector<8x16xi1>, vector<8x16xf32>
    %cst_12 = arith.constant dense<0.000000e+00> : vector<8xf32>
    %44 = vector.multi_reduction <add>, %43, %cst_12 [1] : vector<8x16xf32> to vector<8xf32>
    %45 = vector.shape_cast %44 : vector<8xf32> to vector<8x1xf32>
    %46 = arith.subf %38, %45 : vector<8x1xf32>
    %47 = vector.shape_cast %46 : vector<8x1xf32> to vector<1x8x1xf32>
    %cst_13 = arith.constant dense<0.000000e+00> : vector<1xf32>
    %48 = vector.multi_reduction <add>, %47, %cst_13 [1, 2] : vector<1x8x1xf32> to vector<1xf32>
    %49 = vector.shape_cast %48 : vector<1xf32> to vector<1x1x1xf32>
    %50 = vector.extract %49[0, 0, 0] : f32 from vector<1x1x1xf32>
    %51 = arith.addf %26, %50 : f32
    %52 = vector.broadcast %51 : f32 to vector<1x1x128xf32>
    %c0_14 = arith.constant 0 : index
    %c0_15 = arith.constant 0 : index
    %c0_16 = arith.constant 0 : index
    %53 = vector.load %arg3[%c0_14, %c0_15, %c0_16] : memref<1x1x128xf32, #tpu.memory_space<vmem>>, vector<1x1x128xf32>
    tpu.vector_store %arg3[%c0_14, %c0_15, %c0_16], %52 {strides = array<i32>} : memref<1x1x128xf32, #tpu.memory_space<vmem>>, vector<1x1x128xf32>,
    return
  }
  func.func @transform_0(%arg0: i32) -> (i32, i32) {
    %c0_i32 = arith.constant 0 : i32
    %c0_i32_0 = arith.constant 0 : i32
    return %arg0, %c0_i32 : i32, i32
  }
  func.func @transform_1(%arg0: i32) -> (i32, i32) {
    %c0_i32 = arith.constant 0 : i32
    %c0_i32_0 = arith.constant 0 : i32
    return %arg0, %c0_i32 : i32, i32
  }
  func.func @transform_2(%arg0: i32) -> (i32, i32, i32) {
    %c0_i32 = arith.constant 0 : i32
    %c0_i32_0 = arith.constant 0 : i32
    %c0_i32_1 = arith.constant 0 : i32
    return %arg0, %c0_i32, %c0_i32_0 : i32, i32, i32
  }
}

</mosaic_0001>

<bundles_post_ra>
// kernel: tpu_custom_call.1
= control target key start
LH: loop header
LB: loop body
LE: loop exit
PB: predicated region body
PF: predicated region fallthrough
CT: control target
= control target key end

     0   :  { %7 = vsyncpa [#allocation3], 0  ;;  %s814_s0 = inlined_call_operand.hbm [shape: f32[16,16], index: 0, kind: input, shape index: {}]   ;;  %s815_s1 = inlined_call_operand.hbm [shape: f32[16,16], index: 1, kind: input, shape index: {}]   ;;  %s816_s2 = inlined_call_operand.hbm [shape: f32[2,1,128], index: 2, kind: output, shape index: {}]  }
   0x1   :  { %9 = vsyncpa [#allocation3 + $0x1], 0 }
   0x2   :  { %10 = vsyncpa [#allocation6], 0 }
   0x3   :  { %12 = vsyncpa [#allocation6 + $0x1], 0 }
   0x4   :  { %13 = vsyncpa [#allocation4], 0 }
   0x5   :  { %15 = vsyncpa [#allocation4 + $0x1], 0  ;;  %s595_s9 = smov 0   ;;  %s597_s10 = smov 0  }
   0x6   :  { %s599_s11 = smov 0   ;;  %s601_s12 = smov 0  }
   0x7 LB: > { %s616_s13 = sadd.s32 4294967295, %s575_s12   ;;  %s368_s14 = sadd.s32 4294967294, %s575_s12   ;;  %s575_s12 = sphi %s601_s12, %s835_s12   ;;  %s571_s11 = sphi %s599_s11, %s834_s11   ;;  %s567_s10 = sphi %s597_s10, %s833_s10   ;;  %s563_s9 = sphi %s595_s9, %s832_s9  }
   0x8   : > { %s620_s15 = sadd.s32 1, %s575_s12   ;;  %s28_s16 = sadd.s32 1, %s571_s11 }
   0x9   : > { %s25_s17 = ssub.s32 %s575_s12, %s620_s15  ;;  %p35_p0 = scmp.ne.s32.totalorder %s571_s11, %s567_s10 }
   0xa   : > { %p26_p1 = scmp.eq.s32.totalorder %s25_s17, 0  ;;  %p36_p2 = scmp.eq.s32.totalorder %s575_s12, 0 }
   0xb   : > { %p41_p3 = scmp.ne.s32.totalorder %s567_s10, %s563_s9  ;;  %p42_p4 = scmp.eq.s32.totalorder %s616_s13, 0 }
   0xc   : > { %s632_s18 = scalar_select %p26_p1, %s571_s11, %s28_s16  }
   0xd   : > { %p634_p5 = por %p36_p2, %p35_p0  ;;  %p638_p6 = por %p42_p4, %p41_p3 }
   0xe   : > { %p91_p7 = scmp.eq.s32.totalorder %s616_s13, 1  ;;  %p97_p8 = scmp.eq.s32.totalorder %s368_s14, 1 }
   0xf   : > { %s820_s20 = scalar_select %p638_p6, 1, 0 }
  0x10   : > { %p403_p10 = scmp.lt.s32.totalorder %s575_s12, 2  ;;  %p645_p11 = por %p91_p7, %p35_p0 }
  0x11   : > { %p649_p12 = por %p97_p8, %p41_p3  ;;  %s654_s23 = sand.u32 1, %s571_s11  }
  0x12   : > { %s821_s21 = scalar_select %p645_p11, 1, 0 }
  0x13   : > { %s822_s22 = scalar_select %p649_p12, 1, 0 }
  0x14   : > { %s372_s24 = sshll.u32 %s575_s12, 7  ;;  %s371_s25 = sshll.u32 %s654_s23, 3 }
  0x15   : > { %s663_s28 = scalar_lea.hbm %s814_s0, %s372_s24  ;;  %s121_s29 = scalar_lea.vmem [#allocation2], %s371_s25 }
  0x16   : > { %s128_s30 = sshll.u32 %s121_s29, 4  ;;  %p669_p13 = pnand %p403_p10, %p634_p5  ;;  %s673_s30 = int_to_ptr.vmem [resolvable:$true] %s128_s30 }
  0x17   : > { %s118_s4 = scalar_lea.sflag [#allocation3], %s654_s23  ;;  %s445_s5 = scalar_lea.hbm %s663_s28, 128 }
  0x18   : > { %p446_p2 = scmp.ne.s32.totalorder %s663_s28, %s445_s5  ;;  %p447_p3 = pneg %p669_p13 }
  0x19   : > { %s450_s8 = scalar_lea.hbm %s814_s0, 256  ;;  %p451_p5 = scmp.lt.u32.totalorder %s663_s28, %s814_s0 }
  0x1a   : > { %p448_p4 = pnand %p447_p3, %p446_p2  ;;  %p452_p8 = scmp.lt.u32.totalorder %s450_s8, %s445_s5 }
  0x1b   : > { %p454_p9 = scmp.lt.u32.totalorder %s445_s5, %s663_s28 }
  0x1c   : > { %p449_p7 = pneg %p448_p4  ;;  %p453_p10 = por %p452_p8, %p451_p5 }
  0x1e   : > { %p455_p0 = por %p454_p9, %p453_p10 }
  0x20   : > { %p456_p1 = pnand %p455_p0, %p449_p7 }
  0x22   : > { %459 = shalt.err (!%p456_p1)
}
  0x23   : > { %s460_s17 = scalar_lea.vmem %s673_s30, 128  ;;  %s577_s19 = smov [#allocation2]  }
  0x24   : > { %p461_p2 = scmp.ne.s32.totalorder %s673_s30, %s460_s17  ;;  %s465_s26 = sshll.u32 %s577_s19, 4  ;;  %s466_s26 = int_to_ptr.vmem [resolvable:$false] %s465_s26 }
  0x25   : > { %s467_s27 = scalar_lea.vmem %s466_s26, 256  ;;  %p468_p11 = scmp.lt.s32.totalorder %s673_s30, %s466_s26 }
  0x26   : > { %p463_p4 = pnand %p461_p2, %p447_p3  ;;  %p469_p5 = scmp.lt.s32.totalorder %s467_s27, %s460_s17 }
  0x28   : > { %p464_p12 = pneg %p463_p4  ;;  %p470_p8 = por %p469_p5, %p468_p11 }
  0x2a   : > { %p471_p9 = pnand %p470_p8, %p464_p12 }
  0x2c   : > { %474 = shalt.err (!%p471_p9)
}
  0x2d   : > { %395 = dma.hbm_to_vmem [thread:$0]  (!%p669_p13), %s663_s28, 128, %s673_s30, %s118_s4  }
  0x2e   : > { %p824_p0 = scmp.lt.s32.totalorder %s575_s12, 3  ;;  %p825_p1 = scmp.ge.s32.totalorder %s575_s12, 1 }
  0x2f   : > { %s716_s7 = scalar_lea.hbm %s815_s1, %s372_s24  ;;  %s139_s8 = scalar_lea.vmem [#allocation5], %s371_s25 }
  0x30   : > { %p707_p7 = pnand %p825_p1, %p824_p0  ;;  %s146_s14 = sshll.u32 %s139_s8, 4  ;;  %s147_s14 = int_to_ptr.vmem [resolvable:$true] %s146_s14 }
  0x31   : > { %s136_s28 = scalar_lea.sflag [#allocation6], %s654_s23  ;;  %s475_s30 = scalar_lea.hbm %s716_s7, 128 }
  0x32   : > { %s826_s29 = scalar_select %p707_p7, 1, 0 }
  0x33   : > { %p476_p11 = scmp.ne.s32.totalorder %s716_s7, %s475_s30  ;;  %s480_s24 = scalar_lea.hbm %s815_s1, 256 }
  0x34   : > { %p481_p2 = scmp.lt.u32.totalorder %s716_s7, %s815_s1  ;;  %p482_p4 = scmp.lt.u32.totalorder %s480_s24, %s475_s30 }
  0x35   : > { %p478_p12 = pnand %p476_p11, %p447_p3  ;;  %p484_p8 = scmp.lt.u32.totalorder %s475_s30, %s716_s7 }
  0x36   : > { %p483_p5 = por %p482_p4, %p481_p2 }
  0x37   : > { %p479_p10 = pneg %p478_p12 }
  0x38   : > { %p485_p9 = por %p484_p8, %p483_p5 }
  0x3a   : > { %p486_p0 = pnand %p485_p9, %p479_p10 }
  0x3c   : > { %489 = shalt.err (!%p486_p0)
}
  0x3d   : > { %s490_s23 = scalar_lea.vmem %s147_s14, 128  ;;  %s578_s25 = smov [#allocation5]  }
  0x3e   : > { %p491_p1 = scmp.ne.s32.totalorder %s147_s14, %s490_s23  ;;  %s495_s26 = sshll.u32 %s578_s25, 4  ;;  %s496_s26 = int_to_ptr.vmem [resolvable:$false] %s495_s26 }
  0x3f   : > { %s497_s27 = scalar_lea.vmem %s496_s26, 256  ;;  %p498_p6 = scmp.lt.s32.totalorder %s147_s14, %s496_s26 }
  0x40   : > { %p493_p11 = pnand %p491_p1, %p447_p3  ;;  %p499_p7 = scmp.lt.s32.totalorder %s497_s27, %s490_s23 }
  0x42   : > { %p494_p12 = pneg %p493_p11  ;;  %p500_p2 = por %p499_p7, %p498_p6 }
  0x44   : > { %p501_p4 = pnand %p500_p2, %p494_p12 }
  0x46   : > { %504 = shalt.err (!%p501_p4)
}
  0x47   : > { %398 = dma.hbm_to_vmem [thread:$0]  (!%p669_p13), %s716_s7, 128, %s147_s14, %s136_s28  }
  0x48   : > { %p827_p10 = scmp.ne.s32.totalorder %s826_s29, 0 }
  0x49   : > { %s743_s5 = sand.u32 (!%p827_p10), 1, %s567_s10   ;;  %p828_p3 = scmp.ne.s32.totalorder (!%p827_p10), %s820_s20, 0 }
  0x4a   : > { %155 = sbr.rel (%p827_p10) target bundleno = 631 (0x277), region = 28  ;;  %s376_s6 = sshll.u32 (!%p827_p10), %s743_s5, 3 }
  0x4b   : > { %s158_s8 = scalar_lea.sflag (!%p827_p10), [#allocation3], %s743_s5  ;;  %s161_s30 = scalar_lea.vmem (!%p827_p10), [#allocation2], %s376_s6 }
  0x51   : > { %550 = dma.done.wait (%p828_p3), %s158_s8, 128  }
  0x52   : > { %552 = vsyncadd (%p828_p3), %s158_s8, 4294967168  ;;  %s167_s3 = scalar_lea.sflag [#allocation6], %s743_s5  ;;  %s170_s7 = scalar_lea.vmem [#allocation5], %s376_s6 }
  0x53   : > { %554 = dma.done.wait (%p828_p3), %s167_s3, 128  }
  0x54   : > { %556 = vsyncadd (%p828_p3), %s167_s3, 4294967168  ;;  %v200_v0 = vld [vmem:[%s161_s30] sm:$0xff]  ;;  %vm202_vm0 = vcmask 130048   ;;  %v234_v1 = vld [vmem:[%s170_s7] sm:$0xff]  ;;  %s378_s29 = sshll.u32 %s616_s13, 3  ;;  %v196_v6 = vlaneseq  ;;  %vm223_vm2 = vcmask 7168  }
  0x55   : > { %v201_v2 = vmul.f32 14.285714, %v200_v0  ;;  %v235_v3 = vmul.f32 14.285714, %v234_v1  ;;  %v215_v7 = vstv %s378_s29  ;;  %s379_s20 = sshll.u32 %s616_s13, 4  ;;  %s194_s28 = scalar_lea.vmem [#allocation7], %s743_s5 }
  0x56   : > { %v197_v8 = vshrl.u32 %v196_v6, 7  ;;  %v199_v9 = vand.u32 127, %v196_v6  ;;  %s279_s4 = sshll.u32 %s194_s28, 4  ;;  %s770_s23 = scalar_lea.hbm %s816_s2, %s379_s20  ;;  %s772_s4 = int_to_ptr.vmem [resolvable:$true] %s279_s4 }
  0x57   : > { %v203_v4 = vsel %vm202_vm0, %v201_v2, -inf  ;;  %v236_v5 = vsel %vm202_vm0, %v235_v3, -inf  ;;  %s267_s25 = scalar_lea.sflag [#allocation4], %s743_s5  ;;  %s505_s26 = scalar_lea.vmem %s772_s4, 16 }
  0x58   : > { %204 = vmax.xlane.f32.xlu0 %v203_v4  ;;  %v216_v10 = vadd.s32 %v215_v7, %v197_v8  ;;  %p506_p6 = scmp.ne.s32.totalorder %s772_s4, %s505_s26  ;;  %p829_p13 = scmp.ne.s32.totalorder %s821_s21, 0 }
  0x59   : > { %s579_s13 = smov [#allocation7]  }
  0x5a   : > { %vm217_vm1 = vcmp.eq.s32.totalorder %v199_v9, %v216_v10  ;;  %p507_p7 = pnand %p506_p6, %p829_p13  ;;  %s509_s27 = sshll.u32 %s579_s13, 4  ;;  %s510_s27 = int_to_ptr.vmem [resolvable:$false] %s509_s27 }
  0x5b   : > { %v218_v11 = vsel %vm217_vm1, %v201_v2, 0.0  ;;  %v248_v22 = vsel %vm217_vm1, %v235_v3, 0.0  ;;  %s511_s6 = scalar_lea.vmem %s510_s27, 32  ;;  %p512_p8 = scmp.lt.s32.totalorder %s772_s4, %s510_s27 }
  0x5c   : > { %237 = vmax.xlane.f32.xlu0 %v236_v5  ;;  %v219_v12 = vsel %vm202_vm0, %v218_v11, 0.0  ;;  %v249_v24 = vsel %vm202_vm0, %v248_v22, 0.0  ;;  %p508_p5 = pneg %p507_p7  ;;  %p513_p9 = scmp.lt.s32.totalorder %s511_s6, %s505_s26 }
  0x5e   : > { %p514_p0 = por %p513_p9, %p512_p8 }
  0x60   : > { %220 = vadd.xlane.f32.xlu0 %v219_v12  ;;  %p515_p1 = pnand %p514_p0, %p508_p5 }
  0xe5   : > { %v205_v13 = vpop.xlane.xlu0 %204 }
  0xe6   : > { %v206_v14 = vsub.f32 %v201_v2, %v205_v13 }
  0xe8   : > { %v207_v15 = vmul.f32 1.442695, %v206_v14 }
  0xe9   : > { %v238_v16 = vpop.xlane.xlu0 %237 }
  0xea   : > { %437 = vpow2.f32 %v207_v15  ;;  %v239_v17 = vsub.f32 %v235_v3, %v238_v16 }
  0xec   : > { %v240_v18 = vmul.f32 1.442695, %v239_v17 }
  0xed   : > { %v221_v29 = vpop.xlane.xlu0 %220 }
  0xee   : > { %439 = vpow2.f32 %v240_v18 }
  0xf4   : > { %v438_v19 = vpop.eup %437 }
  0xf5   : > { %v209_v20 = vsel %vm202_vm0, %v438_v19, 0.0 }
  0xf6   : > { %210 = vadd.xlane.f32.xlu1 %v209_v20 }
  0xf8   : > { %v440_v21 = vpop.eup %439 }
  0xf9   : > { %v242_v23 = vsel %vm202_vm0, %v440_v21, 0.0 }
  0xfa   : > { %243 = vadd.xlane.f32.xlu1 %v242_v23 }
  0xfe   : > { %250 = vadd.xlane.f32.xlu1 %v249_v24 }
 0x183   : > { %v211_v25 = vpop.xlane.xlu1 %210 }
 0x184   : > { %441 = vlog2.f32 %v211_v25 }
 0x187   : > { %v244_v26 = vpop.xlane.xlu1 %243 }
 0x188   : > { %443 = vlog2.f32 %v244_v26 }
 0x18b   : > { %v251_v34 = vpop.xlane.xlu1 %250 }
 0x18e   : > { %v442_v27 = vpop.eup %441 }
 0x18f   : > { %v213_v28 = vmul.f32 0.6931472, %v442_v27 }
 0x191   : > { %v214_v30 = vadd.f32 %v213_v28, %v205_v13 }
 0x192   : > { %v444_v31 = vpop.eup %443 }
 0x193   : > { %v246_v32 = vmul.f32 0.6931472, %v444_v31  ;;  %v222_v33 = vsub.f32 %v214_v30, %v221_v29 }
 0x195   : > { %v247_v35 = vadd.f32 %v246_v32, %v238_v16  ;;  %v224_v36 = vsel %vm223_vm2, %v222_v33, 0.0 }
 0x196   : > { %225 = vadd.xlane.f32.xlu0 %v224_v36 }
 0x197   : > { %v252_v37 = vsub.f32 %v247_v35, %v251_v34 }
 0x199   : > { %v253_v38 = vsel %vm223_vm2, %v252_v37, 0.0 }
 0x19a   : > { %254 = vadd.xlane.f32.xlu1 %v253_v38 }
 0x223   : > { %v226_v39 = vpop.xlane.xlu0 %225 }
 0x224   : > { %v227_v40 = vrot.slane %v226_v39, 4 }
 0x226   : > { %v228_v41 = vadd.f32 %v227_v40, %v226_v39 }
 0x227   : > { %v255_v42 = vpop.xlane.xlu1 %254 }
 0x228   : > { %v229_v43 = vrot.slane %v228_v41, 2  ;;  %v256_v44 = vrot.slane %v255_v42, 4 }
 0x22a   : > { %v257_v45 = vadd.f32 %v256_v44, %v255_v42  ;;  %v230_v46 = vadd.f32 %v229_v43, %v228_v41 }
 0x22c   : > { %v258_v47 = vrot.slane %v257_v45, 2  ;;  %v231_v48 = vrot.slane %v230_v46, 1 }
 0x22e   : > { %v259_v49 = vadd.f32 %v258_v47, %v257_v45  ;;  %v232_v50 = vadd.f32 %v231_v48, %v230_v46 }
 0x230   : > { %382 = vpush %v232_v50  ;;  %v260_v51 = vrot.slane %v259_v49, 1 }
 0x232   : > { %v261_v52 = vadd.f32 %v260_v51, %v259_v49 }
 0x234   : > { %384 = vpush %v261_v52 }
 0x261   : > { %s383_s14 = spop %382 }
 0x265   : > { %s385_s16 = spop %384 }
 0x266   : > { %s263_s24 = sadd.f32 %s385_s16, %s383_s14 }
 0x268   : > { %v264_v53 = vstv %s263_s24 }
 0x269   : > { %265 = vst [vmem:[%s194_s28] sm:$0x1] %v264_v53 }
 0x26a   : > { %518 = shalt.err (!%p515_p1)
}
 0x26b   : > { %s519_s5 = scalar_lea.hbm %s770_s23, 16  ;;  %s523_s3 = scalar_lea.hbm %s816_s2, 32 }
 0x26c   : > { %p520_p11 = scmp.ne.s32.totalorder %s770_s23, %s519_s5  ;;  %p524_p4 = scmp.lt.u32.totalorder %s770_s23, %s816_s2 }
 0x26d   : > { %p525_p10 = scmp.lt.u32.totalorder %s523_s3, %s519_s5  ;;  %p527_p6 = scmp.lt.u32.totalorder %s519_s5, %s770_s23 }
 0x26e   : > { %p521_p12 = pnand %p520_p11, %p829_p13 }
 0x26f   : > { %p526_p3 = por %p525_p10, %p524_p4 }
 0x270   : > { %p522_p2 = pneg %p521_p12 }
 0x271   : > { %p528_p7 = por %p527_p6, %p526_p3 }
 0x273   : > { %p529_p5 = pnand %p528_p7, %p522_p2 }
 0x275   : > { %532 = shalt.err (!%p529_p5)
}
 0x276   : > { %390 = dma.vmem_to_hbm [thread:$0]  (%p829_p13), %s772_s4, 16, %s770_s23, %s267_s25  }
 0x277 PF: > { %s291_s20 = sand.u32 1, %s563_s9   ;;  %p830_p8 = scmp.ne.s32.totalorder %s822_s22, 0 }
 0x278   : > { %p831_p9 = scmp.ge.s32.totalorder %s575_s12, 2  ;;  %s292_s14 = scalar_lea.sflag [#allocation4], %s291_s20 }
 0x27a   : > { %p400_p0 = pnand %p831_p9, %p830_p8 }
 0x27c   : > { %558 = dma.done.wait (!%p400_p0), %s292_s14, 16  }
 0x27d   : > { %560 = vsyncadd (!%p400_p0), %s292_s14, 4294967280  ;;  %p18_p1 = scmp.ge.s32.totalorder %s620_s15, 4   ;;  %s832_s9 = smov %s567_s10 }
 0x27e   : > { %s833_s10 = smov %s571_s11  ;;  %s834_s11 = smov %s632_s18 }
 0x27f   : > { %s835_s12 = smov %s620_s15  ;;  %20 = sbr.rel (!%p18_p1) target bundleno = 7 (0x7), region = 86 }
 0x286   :  { %296 = vsyncpa [#allocation3], 1 }
 0x287   :  { %298 = vsyncpa [#allocation3 + $0x1], 1 }
 0x288   :  { %299 = vsyncpa [#allocation6], 1 }
 0x289   :  { %301 = vsyncpa [#allocation6 + $0x1], 1 }
 0x28a   :  { %302 = vsyncpa [#allocation4], 1 }
 0x28b   :  { %304 = vsyncpa [#allocation4 + $0x1], 1 }

</bundles_post_ra>
